<compile_context>
chip_gen: v6e
topology: v6e:2x2x1
jax: 0.10.0
libtpu: 0.0.40
codegen_flags: <defaults>
</compile_context>

<pallas_src>
import jax
import jax.numpy as jnp
from jax.experimental import pallas as pl
from jax.experimental.pallas import tpu as pltpu

# Compiler-params class name differs across JAX releases; prefer the current one.
_CompilerParams = getattr(pltpu, "CompilerParams", None) or getattr(
    pltpu, "TPUCompilerParams"
)

_VMEM_LIMIT_BYTES = 32 * 1024 * 1024      # fits v5e/v6e/v7x physical VMEM
_VMEM_TILE_BUDGET = 8 * 1024 * 1024       # conservative double-buffered budget


# ----------------------------------------------------------------------------
# Helpers: tile sizing + batch padding (zero rows are KL-neutral: 1+0-0-e^0 = 0)
# ----------------------------------------------------------------------------
def _round_up(n, m):
    return ((n + m - 1) // m) * m


def _auto_block_rows(n_rows, d, n_streams, elem_bytes=4,
                     budget_bytes=_VMEM_TILE_BUDGET):
    """Biggest row-tile (multiple of 8) whose double-buffered streams fit."""
    per_row = n_streams * 2 * d * elem_bytes        # 2 = double buffering
    tb = max(8, (budget_bytes // max(per_row, 1)) // 8 * 8)
    return min(tb, _round_up(n_rows, 8))


def _pad_rows(a, rows_padded):
    pad = rows_padded - a.shape[0]
    return a if pad == 0 else jnp.pad(a, ((0, pad), (0, 0)))


# ----------------------------------------------------------------------------
# Forward: base VAEEncoder.forward is the identity.  Pure data movement ->
# not a Pallas kernel (a kernel here would only burn HBM bandwidth).
# ----------------------------------------------------------------------------
def vae_encoder_forward(x):
    return x


# ----------------------------------------------------------------------------
# Fused kernel: z = mu + eps * exp(0.5*logvar)  AND  KL partial-sum accumulation
# in a single pass over the (mu, logvar, eps) tiles.
# ----------------------------------------------------------------------------
def _reparam_kl_kernel(mu_ref, lv_ref, eps_ref, z_ref, kl_ref):
    @pl.when(pl.program_id(0) == 0)
    def _init():
        kl_ref[...] = jnp.zeros_like(kl_ref)

    mu = mu_ref[...]
    lv = lv_ref[...]
    z_ref[...] = mu + eps_ref[...] * jnp.exp(0.5 * lv)
    # raw (un-scaled-by-beta) KL contribution of this block
    kl_ref[...] += -0.5 * jnp.sum(1.0 + lv - mu * mu - jnp.exp(lv))


# Standalone divergence_loss kernel (mu/logvar only).
def _kl_kernel(mu_ref, lv_ref, kl_ref):
    @pl.when(pl.program_id(0) == 0)
    def _init():
        kl_ref[...] = jnp.zeros_like(kl_ref)

    mu = mu_ref[...]
    lv = lv_ref[...]
    kl_ref[...] += -0.5 * jnp.sum(1.0 + lv - mu * mu - jnp.exp(lv))


def _compiler_params():
    return _CompilerParams(
        dimension_semantics=("arbitrary",),       # KL accumulates across the grid
        vmem_limit_bytes=_VMEM_LIMIT_BYTES,
    )


# ----------------------------------------------------------------------------
# Wrappers
# ----------------------------------------------------------------------------
def reparameterize_and_divergence(mu, logvar, eps, beta=1.0, reduction="sum",
                                  block_rows=None):
    """Single-HBM-pass fused reparameterize + divergence_loss.

    Returns (z, divergence_loss) where divergence_loss follows
    VAEEncoder.divergence_loss semantics (beta * sum or beta * mean over batch).
    """
    B, D = mu.shape
    tb = block_rows if block_rows is not None else _auto_block_rows(B, D, n_streams=4)
    tb = _round_up(tb, 8)
    tb = min(tb, _round_up(B, 8))
    Bp = _round_up(B, tb)
    mu_p, lv_p, eps_p = (_pad_rows(a, Bp) for a in (mu, logvar, eps))

    z_p, kl = pl.pallas_call(
        _reparam_kl_kernel,
        grid=(Bp // tb,),
        in_specs=[pl.BlockSpec((tb, D), lambda i: (i, 0))] * 3,
        out_specs=[
            pl.BlockSpec((tb, D), lambda i: (i, 0)),   # z tiles (independent)
            pl.BlockSpec((1, 1), lambda i: (0, 0)),    # resident KL accumulator
        ],
        out_shape=(
            jax.ShapeDtypeStruct((Bp, D), mu.dtype),
            jax.ShapeDtypeStruct((1, 1), jnp.float32),
        ),
        compiler_params=_compiler_params(),
    )(mu_p, lv_p, eps_p)

    z = z_p[:B]
    kl_sum = kl[0, 0]                                   # raw KL (unscaled)
    div = beta * (kl_sum if reduction == "sum" else kl_sum / B)
    return z, div


def reparameterize(mu, logvar, eps, block_rows=None):
    """VAEEncoder.reparameterize: z = mu + eps * exp(0.5 * logvar)."""
    z, _ = reparameterize_and_divergence(mu, logvar, eps, block_rows=block_rows)
    return z


def divergence_loss(mu, logvar, beta=1.0, reduction="sum", block_rows=None):
    """VAEEncoder.divergence_loss (KL to N(0,1)), beta * sum or beta * mean."""
    B, D = mu.shape
    tb = block_rows if block_rows is not None else _auto_block_rows(B, D, n_streams=2)
    tb = _round_up(tb, 8)
    tb = min(tb, _round_up(B, 8))
    Bp = _round_up(B, tb)
    mu_p, lv_p = _pad_rows(mu, Bp), _pad_rows(logvar, Bp)

    kl = pl.pallas_call(
        _kl_kernel,
        grid=(Bp // tb,),
        in_specs=[pl.BlockSpec((tb, D), lambda i: (i, 0))] * 2,
        out_specs=pl.BlockSpec((1, 1), lambda i: (0, 0)),
        out_shape=jax.ShapeDtypeStruct((1, 1), jnp.float32),
        compiler_params=_compiler_params(),
    )(mu_p, lv_p)

    kl_sum = kl[0, 0]
    return beta * (kl_sum if reduction == "sum" else kl_sum / B)


# ----------------------------------------------------------------------------
if __name__ == "__main__":
    key = jax.random.PRNGKey(0)
    k_mu, k_lv, k_eps, k_x = jax.random.split(key, 4)

    # Lane-dense small shapes: D multiple of 128, B multiple of 8.
    B, D = 32, 256
    mu = jax.random.normal(k_mu, (B, D), dtype=jnp.float32)
    logvar = 0.1 * jax.random.normal(k_lv, (B, D), dtype=jnp.float32)
    eps = jax.random.normal(k_eps, (B, D), dtype=jnp.float32)
    beta = 0.75

    # forward: identity (no kernel).
    x = jax.random.normal(k_x, (B, D), dtype=jnp.float32)
    y = vae_encoder_forward(x)
    assert y is x

    # Fused reparameterize + KL, tiled over B (grid=(4,)) to exercise the
    # pipelined accumulator path.
    z, div_sum = reparameterize_and_divergence(
        mu, logvar, eps, beta=beta, reduction="sum", block_rows=8)

    # Standalone divergence_loss: explicit tiling and auto (single-block) tiling.
    div_only = divergence_loss(mu, logvar, beta=beta, reduction="sum", block_rows=8)
    div_mean = divergence_loss(mu, logvar, beta=beta, reduction="mean")

    jax.block_until_ready((z, div_sum, div_only, div_mean))

    # Plain-JAX reference (matches the PyTorch formulas).
    z_ref = mu + eps * jnp.exp(0.5 * logvar)
    kl_row = -0.5 * jnp.sum(1.0 + logvar - mu**2 - jnp.exp(logvar), axis=-1)
    ref_sum = beta * jnp.sum(kl_row)
    ref_mean = beta * jnp.mean(kl_row)

    assert jnp.allclose(z, z_ref, rtol=1e-5, atol=1e-5)
    assert jnp.allclose(div_sum, ref_sum, rtol=1e-4, atol=1e-2)
    assert jnp.allclose(div_only, ref_sum, rtol=1e-4, atol=1e-2)
    assert jnp.allclose(div_mean, ref_mean, rtol=1e-4, atol=1e-2)

    print("KERNEL_OK")
</pallas_src>

<mosaic_0001>
module attributes {stable_mosaic.version = 11 : i64} {
  func.func @_reparam_kl_kernel(%arg0: i32, %arg1: memref<8x256xf32, #tpu.memory_space<vmem>>, %arg2: memref<8x256xf32, #tpu.memory_space<vmem>>, %arg3: memref<8x256xf32, #tpu.memory_space<vmem>>, %arg4: memref<8x256xf32, #tpu.memory_space<vmem>>, %arg5: memref<1x1xf32, #tpu.memory_space<vmem>>) attributes {dimension_semantics = [#tpu.dimension_semantics<arbitrary>], iteration_bounds = array<i64: 4>, scalar_prefetch = 0 : i64, scratch_operands = 0 : i64, tpu.core_type = #tpu.core_type<tc>, window_params = [{transform_indices = @transform_0, window_bounds = array<i64: 8, 256>}, {transform_indices = @transform_1, window_bounds = array<i64: 8, 256>}, {transform_indices = @transform_2, window_bounds = array<i64: 8, 256>}, {transform_indices = @transform_3, window_bounds = array<i64: 8, 256>}, {pipeline_mode = #tpu.pipeline_mode<synchronous>, transform_indices = @transform_4, window_bounds = array<i64: 1, 1>}]} {
    %c0_i32 = arith.constant 0 : i32
    %0 = arith.cmpi eq, %arg0, %c0_i32 : i32
    %1 = arith.extui %0 : i1 to i32
    %c0_i32_0 = arith.constant 0 : i32
    %2 = arith.cmpi ne, %1, %c0_i32_0 : i32
    scf.if %2 {
      %cst_15 = arith.constant 0.000000e+00 : f32
      %27 = vector.broadcast %cst_15 : f32 to vector<1x1xf32>
      %c0_16 = arith.constant 0 : index
      %c0_17 = arith.constant 0 : index
      %28 = vector.load %arg5[%c0_16, %c0_17] : memref<1x1xf32, #tpu.memory_space<vmem>>, vector<1x1xf32>
      tpu.vector_store %arg5[%c0_16, %c0_17], %27 {strides = array<i32>} : memref<1x1xf32, #tpu.memory_space<vmem>>, vector<1x1xf32>,
    } else {
    }
    %c0 = arith.constant 0 : index
    %c0_1 = arith.constant 0 : index
    %3 = vector.load %arg1[%c0, %c0_1] : memref<8x256xf32, #tpu.memory_space<vmem>>, vector<8x256xf32>
    %c0_2 = arith.constant 0 : index
    %c0_3 = arith.constant 0 : index
    %4 = vector.load %arg2[%c0_2, %c0_3] : memref<8x256xf32, #tpu.memory_space<vmem>>, vector<8x256xf32>
    %c0_4 = arith.constant 0 : index
    %c0_5 = arith.constant 0 : index
    %5 = vector.load %arg3[%c0_4, %c0_5] : memref<8x256xf32, #tpu.memory_space<vmem>>, vector<8x256xf32>
    %cst = arith.constant 5.000000e-01 : f32
    %6 = vector.broadcast %cst : f32 to vector<8x256xf32>
    %7 = arith.mulf %6, %4 : vector<8x256xf32>
    %8 = math.exp %7 : vector<8x256xf32>
    %9 = arith.mulf %5, %8 : vector<8x256xf32>
    %10 = arith.addf %3, %9 : vector<8x256xf32>
    %c0_6 = arith.constant 0 : index
    %c0_7 = arith.constant 0 : index
    %11 = vector.load %arg4[%c0_6, %c0_7] : memref<8x256xf32, #tpu.memory_space<vmem>>, vector<8x256xf32>
    tpu.vector_store %arg4[%c0_6, %c0_7], %10 {strides = array<i32>} : memref<8x256xf32, #tpu.memory_space<vmem>>, vector<8x256xf32>,
    %c0_8 = arith.constant 0 : index
    %c0_9 = arith.constant 0 : index
    %12 = vector.load %arg5[%c0_8, %c0_9] : memref<1x1xf32, #tpu.memory_space<vmem>>, vector<1x1xf32>
    %cst_10 = arith.constant 1.000000e+00 : f32
    %13 = vector.broadcast %cst_10 : f32 to vector<8x256xf32>
    %14 = arith.addf %13, %4 : vector<8x256xf32>
    %15 = arith.mulf %3, %3 : vector<8x256xf32>
    %16 = arith.subf %14, %15 : vector<8x256xf32>
    %17 = math.exp %4 : vector<8x256xf32>
    %18 = arith.subf %16, %17 : vector<8x256xf32>
    %19 = vector.shape_cast %18 : vector<8x256xf32> to vector<1x8x256xf32>
    %cst_11 = arith.constant dense<0.000000e+00> : vector<1xf32>
    %20 = vector.multi_reduction <add>, %19, %cst_11 [1, 2] : vector<1x8x256xf32> to vector<1xf32>
    %21 = vector.shape_cast %20 : vector<1xf32> to vector<1x1x1xf32>
    %22 = vector.extract %21[0, 0, 0] : f32 from vector<1x1x1xf32>
    %cst_12 = arith.constant -5.000000e-01 : f32
    %23 = arith.mulf %cst_12, %22 : f32
    %24 = vector.broadcast %23 : f32 to vector<1x1xf32>
    %25 = arith.addf %12, %24 : vector<1x1xf32>
    %c0_13 = arith.constant 0 : index
    %c0_14 = arith.constant 0 : index
    %26 = vector.load %arg5[%c0_13, %c0_14] : memref<1x1xf32, #tpu.memory_space<vmem>>, vector<1x1xf32>
    tpu.vector_store %arg5[%c0_13, %c0_14], %25 {strides = array<i32>} : memref<1x1xf32, #tpu.memory_space<vmem>>, vector<1x1xf32>,
    return
  }
  func.func @transform_0(%arg0: i32) -> (i32, i32) {
    %c0_i32 = arith.constant 0 : i32
    %c0_i32_0 = arith.constant 0 : i32
    return %arg0, %c0_i32 : i32, i32
  }
  func.func @transform_1(%arg0: i32) -> (i32, i32) {
    %c0_i32 = arith.constant 0 : i32
    %c0_i32_0 = arith.constant 0 : i32
    return %arg0, %c0_i32 : i32, i32
  }
  func.func @transform_2(%arg0: i32) -> (i32, i32) {
    %c0_i32 = arith.constant 0 : i32
    %c0_i32_0 = arith.constant 0 : i32
    return %arg0, %c0_i32 : i32, i32
  }
  func.func @transform_3(%arg0: i32) -> (i32, i32) {
    %c0_i32 = arith.constant 0 : i32
    %c0_i32_0 = arith.constant 0 : i32
    return %arg0, %c0_i32 : i32, i32
  }
  func.func @transform_4(%arg0: i32) -> (i32, i32) {
    %c0_i32 = arith.constant 0 : i32
    %c0_i32_0 = arith.constant 0 : i32
    %c0_i32_1 = arith.constant 0 : i32
    return %c0_i32, %c0_i32_0 : i32, i32
  }
}

</mosaic_0001>

<bundles_post_ra>
// kernel: tpu_custom_call.1
= control target key start
LH: loop header
LB: loop body
LE: loop exit
PB: predicated region body
PF: predicated region fallthrough
CT: control target
= control target key end

     0   :  { %s1038_s0 = inlined_call_operand.hbm [shape: f32[32,256], index: 0, kind: input, shape index: {}]   ;;  %s1039_s1 = inlined_call_operand.hbm [shape: f32[32,256], index: 1, kind: input, shape index: {}]   ;;  %s1040_s2 = inlined_call_operand.hbm [shape: f32[32,256], index: 2, kind: input, shape index: {}]   ;;  %s1041_s3 = inlined_call_operand.hbm [shape: f32[32,256], index: 3, kind: output, shape index: {0}]   ;;  %s1042_s4 = inlined_call_operand.hbm [shape: f32[1,1], index: 4, kind: output, shape index: {1}]  }
   0x1   :  { %1048 = sst [smem:[#allocation17_spill]] %s1038_s0 }
   0x2   :  { %1049 = sst [smem:[#allocation18_spill]] %s1039_s1 }
   0x3   :  { %10 = vsyncpa [#allocation3], 0 }
   0x4   :  { %12 = vsyncpa [#allocation3 + $0x1], 0 }
   0x5   :  { %13 = vsyncpa [#allocation6], 0 }
   0x6   :  { %15 = vsyncpa [#allocation6 + $0x1], 0 }
   0x7   :  { %16 = vsyncpa [#allocation4], 0 }
   0x8   :  { %18 = vsyncpa [#allocation4 + $0x1], 0 }
   0x9   :  { %19 = vsyncpa [#allocation10], 0  ;;  %s804_s15 = smov 0   ;;  %s806_s16 = smov 0  }
   0xa   :  { %s808_s17 = smov 0   ;;  %s810_s18 = smov 0  }
   0xb LB: > { %1050 = sst [smem:[#allocation15_spill]] %s767_s17  ;;  %s825_s19 = sadd.s32 4294967295, %s771_s18   ;;  %s771_s18 = sphi %s810_s18, %s1074_s18   ;;  %s767_s17 = sphi %s808_s17, %s1071_s17   ;;  %s763_s16 = sphi %s806_s16, %s1073_s16   ;;  %s759_s15 = sphi %s804_s15, %s1072_s15  }
   0xc   : > { %s488_s20 = sadd.s32 4294967294, %s771_s18   ;;  %s829_s21 = sadd.s32 1, %s771_s18  }
   0xd   : > { %s32_s22 = sadd.s32 1, %s767_s17  ;;  %s29_s23 = ssub.s32 %s771_s18, %s829_s21 }
   0xe   : > { %p39_p0 = scmp.ne.s32.totalorder %s767_s17, %s763_s16  ;;  %p30_p1 = scmp.eq.s32.totalorder %s29_s23, 0 }
   0xf   : > { %p40_p2 = scmp.eq.s32.totalorder %s771_s18, 0  ;;  %p45_p3 = scmp.ne.s32.totalorder %s763_s16, %s759_s15 }
  0x10   : > { %p46_p4 = scmp.eq.s32.totalorder %s825_s19, 0  ;;  %p1043_p7 = scmp.eq.s32.totalorder %s825_s19, 3 }
  0x11   : > { %s841_s24 = scalar_select %p30_p1, %s767_s17, %s32_s22  }
  0x12   : > { %p41_p5 = por %p40_p2, %p39_p0  ;;  %p843_p6 = por %p46_p4, %p45_p3 }
  0x13   : > { %1051 = sst [smem:[#allocation16_spill]] %s841_s24  ;;  %p127_p8 = scmp.eq.s32.totalorder %s488_s20, 3 }
  0x14   : > { %s1052_s25 = scalar_select %p843_p6, 1, 0 }
  0x15   : > { %p545_p9 = scmp.lt.s32.totalorder %s771_s18, 4  ;;  %p851_p10 = por %p1043_p7, %p39_p0 }
  0x16   : > { %p855_p11 = por %p127_p8, %p45_p3  ;;  %s1044_s28 = sand.u32 1, %s767_s17  }
  0x17   : > { %s1053_s26 = scalar_select %p851_p10, 1, 0 }
  0x18   : > { %s1054_s27 = scalar_select %p855_p11, 1, 0 }
  0x19   : > { %s861_s29 = sshll.u32 %s771_s18, 8  ;;  %s865_s30 = sshll.u32 %s1044_s28, 4 }
  0x1a   : > { %p867_p12 = pnand %p545_p9, %p41_p5  ;;  %s187_s6 = sand.u32 1, %s771_s18  }
  0x1b   : > { %s1056_s1 = sld [smem:[#allocation18_spill]]  ;;  %s191_s10 = scalar_lea.vmem [#allocation5], %s865_s30 }
  0x1c   : > { %s199_s11 = sshll.u32 %s191_s10, 4  ;;  %s880_s12 = scalar_lea.sflag [#allocation6], %s187_s6  ;;  %s200_s11 = int_to_ptr.vmem [resolvable:$true] %s199_s11 }
  0x1d   : > { %p886_p1 = pneg %p867_p12 }
  0x21   : > { %s876_s9 = scalar_lea.hbm %s1056_s1, %s861_s29  ;;  %s596_s23 = scalar_lea.hbm %s1056_s1, 1024 }
  0x22   : > { %s591_s13 = scalar_lea.hbm %s876_s9, 256  ;;  %p597_p4 = scmp.lt.s32.totalorder %s876_s9, %s1056_s1 }
  0x23   : > { %p592_p0 = scmp.ne.s32.totalorder %s876_s9, %s591_s13  ;;  %p598_p5 = scmp.lt.s32.totalorder %s596_s23, %s591_s13 }
  0x25   : > { %p594_p2 = pnand %p886_p1, %p592_p0  ;;  %p599_p8 = por %p598_p5, %p597_p4 }
  0x27   : > { %p595_p3 = pneg %p594_p2 }
  0x29   : > { %p600_p9 = pnand %p599_p8, %p595_p3 }
  0x2b   : > { %603 = shalt.err (!%p600_p9)
}
  0x2c   : > { %s604_s6 = scalar_lea.vmem %s200_s11, 256  ;;  %s773_s10 = smov [#allocation5]  }
  0x2d   : > { %p605_p7 = scmp.ne.s32.totalorder %s200_s11, %s604_s6  ;;  %s609_s28 = sshll.u32 %s773_s10, 4  ;;  %s610_s28 = int_to_ptr.vmem [resolvable:$false] %s609_s28 }
  0x2e   : > { %s611_s24 = scalar_lea.vmem %s610_s28, 512  ;;  %p612_p0 = scmp.lt.s32.totalorder %s200_s11, %s610_s28 }
  0x2f   : > { %p607_p13 = pnand %p605_p7, %p886_p1  ;;  %p613_p2 = scmp.lt.s32.totalorder %s611_s24, %s604_s6 }
  0x31   : > { %p608_p11 = pneg %p607_p13  ;;  %p614_p10 = por %p613_p2, %p612_p0 }
  0x33   : > { %p615_p6 = pnand %p614_p10, %p608_p11 }
  0x35   : > { %618 = shalt.err (!%p615_p6)
}
  0x36   : > { %537 = dma.hbm_to_vmem [thread:$0]  (!%p867_p12), %s876_s9, 256, %s200_s11, %s880_s12  }
  0x37   : > { %p223_p7 = scmp.lt.s32.totalorder %s771_s18, 5  ;;  %s1058_s0 = sld [smem:[#allocation17_spill]] }
  0x38   : > { %p1059_p13 = scmp.ge.s32.totalorder %s771_s18, 1  ;;  %s172_s22 = scalar_lea.vmem [#allocation2], %s865_s30 }
  0x39   : > { %s180_s23 = sshll.u32 %s172_s22, 4  ;;  %s1061_s7 = sand.u32 1, %s767_s17   ;;  %s181_s23 = int_to_ptr.vmem [resolvable:$true] %s180_s23 }
  0x3a   : > { %p914_p6 = pnand %p1059_p13, %p223_p7  ;;  %s169_s8 = scalar_lea.sflag [#allocation3], %s1061_s7 }
  0x3c   : > { %s1060_s24 = scalar_select %p914_p6, 1, 0 }
  0x3d   : > { %s910_s28 = scalar_lea.hbm %s1058_s0, %s861_s29  ;;  %s624_s10 = scalar_lea.hbm %s1058_s0, 1024 }
  0x3e   : > { %s619_s9 = scalar_lea.hbm %s910_s28, 256  ;;  %p625_p4 = scmp.lt.s32.totalorder %s910_s28, %s1058_s0 }
  0x3f   : > { %p620_p10 = scmp.ne.s32.totalorder %s910_s28, %s619_s9  ;;  %p626_p5 = scmp.lt.s32.totalorder %s624_s10, %s619_s9 }
  0x41   : > { %p622_p11 = pnand %p620_p10, %p886_p1  ;;  %p627_p8 = por %p626_p5, %p625_p4 }
  0x43   : > { %p623_p3 = pneg %p622_p11 }
  0x45   : > { %p628_p9 = pnand %p627_p8, %p623_p3 }
  0x47   : > { %631 = shalt.err (!%p628_p9)
}
  0x48   : > { %s632_s22 = scalar_lea.vmem %s181_s23, 256  ;;  %s774_s7 = smov [#allocation2]  }
  0x49   : > { %p633_p0 = scmp.ne.s32.totalorder %s181_s23, %s632_s22  ;;  %s637_s1 = sshll.u32 %s774_s7, 4  ;;  %s638_s1 = int_to_ptr.vmem [resolvable:$false] %s637_s1 }
  0x4a   : > { %s639_s17 = scalar_lea.vmem %s638_s1, 512  ;;  %p640_p13 = scmp.lt.s32.totalorder %s181_s23, %s638_s1 }
  0x4b   : > { %p635_p2 = pnand %p633_p0, %p886_p1  ;;  %p641_p10 = scmp.lt.s32.totalorder %s639_s17, %s632_s22 }
  0x4d   : > { %p636_p7 = pneg %p635_p2  ;;  %p642_p11 = por %p641_p10, %p640_p13 }
  0x4f   : > { %p643_p6 = pnand %p642_p11, %p636_p7 }
  0x51   : > { %646 = shalt.err (!%p643_p6)
}
  0x52   : > { %534 = dma.hbm_to_vmem [thread:$0]  (!%p867_p12), %s910_s28, 256, %s181_s23, %s169_s8  }
  0x53   : > { %s216_s6 = scalar_lea.hbm %s1040_s2, %s861_s29  ;;  %s210_s10 = scalar_lea.vmem [#allocation7], %s865_s30 }
  0x54   : > { %s218_s13 = sshll.u32 %s210_s10, 4  ;;  %s647_s20 = scalar_lea.hbm %s216_s6, 256  ;;  %s219_s13 = int_to_ptr.vmem [resolvable:$true] %s218_s13 }
  0x55   : > { %p648_p3 = scmp.ne.s32.totalorder %s216_s6, %s647_s20  ;;  %s652_s22 = scalar_lea.hbm %s1040_s2, 1024 }
  0x56   : > { %p653_p6 = scmp.lt.s32.totalorder %s216_s6, %s1040_s2  ;;  %p654_p8 = scmp.lt.s32.totalorder %s652_s22, %s647_s20 }
  0x57   : > { %p650_p4 = pnand %p648_p3, %p886_p1 }
  0x58   : > { %p655_p9 = por %p654_p8, %p653_p6 }
  0x59   : > { %p651_p5 = pneg %p650_p4 }
  0x5b   : > { %p656_p0 = pnand %p655_p9, %p651_p5 }
  0x5d   : > { %659 = shalt.err (!%p656_p0)
}
  0x5e   : > { %s660_s29 = scalar_lea.vmem %s219_s13, 256  ;;  %s775_s30 = smov [#allocation7]  }
  0x5f   : > { %p661_p2 = scmp.ne.s32.totalorder %s219_s13, %s660_s29  ;;  %s665_s28 = sshll.u32 %s775_s30, 4  ;;  %s666_s28 = int_to_ptr.vmem [resolvable:$false] %s665_s28 }
  0x60   : > { %s667_s23 = scalar_lea.vmem %s666_s28, 512  ;;  %p668_p10 = scmp.lt.s32.totalorder %s219_s13, %s666_s28 }
  0x61   : > { %p663_p7 = pnand %p661_p2, %p886_p1  ;;  %p669_p11 = scmp.lt.s32.totalorder %s667_s23, %s660_s29 }
  0x63   : > { %p664_p13 = pneg %p663_p7  ;;  %p670_p3 = por %p669_p11, %p668_p10 }
  0x65   : > { %p671_p4 = pnand %p670_p3, %p664_p13 }
  0x67   : > { %674 = shalt.err (!%p671_p4)
}
  0x68   : > { %540 = dma.hbm_to_vmem [thread:$0]  (!%p867_p12), %s216_s6, 256, %s219_s13, %s880_s12  }
  0x69   : > { %p1062_p5 = scmp.ne.s32.totalorder %s1060_s24, 0 }
  0x6a   : > { %s958_s0 = sand.u32 (!%p1062_p5), 1, %s763_s16   ;;  %p1063_p1 = scmp.ne.s32.totalorder (!%p1062_p5), %s1052_s25, 0 }
  0x6b   : > { %227 = sbr.rel (%p1062_p5) target bundleno = 362 (0x16a), region = 32  ;;  %s961_s14 = sshll.u32 (!%p1062_p5), %s958_s0, 4 }
  0x6c   : > { %s230_s8 = scalar_lea.sflag (!%p1062_p5), [#allocation3], %s958_s0  ;;  %s233_s9 = scalar_lea.vmem (!%p1062_p5), [#allocation2], %s961_s14 }
  0x70   : > { %742 = dma.done.wait (%p1063_p1), %s230_s8, 256  }
  0x71   : > { %744 = vsyncadd (%p1063_p1), %s230_s8, 4294967040  ;;  %s238_s5 = sand.u32 1, %s825_s19   ;;  %s242_s24 = scalar_lea.vmem [#allocation5], %s961_s14 }
  0x72   : > { %s239_s12 = scalar_lea.sflag [#allocation6], %s238_s5 }
  0x73   : > { %746 = dma.done.wait (%p1063_p1), %s239_s12, 512  }
  0x74   : > { %748 = vsyncadd (%p1063_p1), %s239_s12, 4294966784  ;;  %s251_s11 = scalar_lea.vmem [#allocation7], %s961_s14  ;;  %s977_s6 = scalar_lea.vmem [#allocation8], %s961_s14 }
  0x75   : > { %p505_p12 = scmp.ne.s32.totalorder %s825_s19, 0 }
  0x77   : > { %289 = sbr.rel (%p505_p12) target bundleno = 126 (0x7e), region = 48 }
  0x7c   : > { %vm290_vm0 = vcmask 0   ;;  %v776_v0 = vmov 0.0  }
  0x7d   : > { %291 = vst.msk [vmem:[#allocation9] sm:$0x1] %vm290_vm0, %v776_v0 }
  0x7e PF: > { %v294_v1 = vld [vmem:[%s242_s24] sm:$0xff]  ;;  %v295_v2 = vld [vmem:[%s242_s24 + $0x8] sm:$0xff]  ;;  %s516_s25 = sshll.u32 %s825_s19, 8  ;;  %s353_s1 = sshll.u32 %s977_s6, 4  ;;  %s354_s1 = int_to_ptr.vmem [resolvable:$true] %s353_s1 }
  0x7f   : > { %v317_v3 = vmul.f32 1.442695, %v294_v1  ;;  %v319_v4 = vmul.f32 1.442695, %v295_v2  ;;  %v292_v5 = vld [vmem:[%s233_s9] sm:$0xff]  ;;  %v293_v6 = vld [vmem:[%s233_s9 + $0x8] sm:$0xff]  ;;  %s988_s20 = scalar_lea.hbm %s1041_s3, %s516_s25 }
  0x80   : > { %v311_v7 = vadd.f32 1.0, %v294_v1  ;;  %v313_v8 = vmul.f32 %v292_v5, %v292_v5  ;;  %v312_v9 = vadd.f32 1.0, %v295_v2  ;;  %v314_v10 = vmul.f32 %v293_v6, %v293_v6  ;;  %v296_v24 = vld [vmem:[%s251_s11] sm:$0xff]  ;;  %v297_v25 = vld [vmem:[%s251_s11 + $0x8] sm:$0xff]  ;;  %s339_s17 = scalar_lea.sflag [#allocation4], %s958_s0  ;;  %s675_s22 = scalar_lea.vmem %s354_s1, 256 }
  0x81   : > { %583 = vpow2.f32 %v317_v3  ;;  %v298_v18 = vmul.f32 0.5, %v294_v1  ;;  %v299_v19 = vmul.f32 0.5, %v295_v2  ;;  %p676_p6 = scmp.ne.s32.totalorder %s354_s1, %s675_s22  ;;  %p1064_p8 = scmp.ne.s32.totalorder %s1053_s26, 0 }
  0x82   : > { %585 = vpow2.f32 %v319_v4  ;;  %v315_v11 = vsub.f32 %v311_v7, %v313_v8  ;;  %v316_v13 = vsub.f32 %v312_v9, %v314_v10  ;;  %s777_s7 = smov [#allocation8]  }
  0x83   : > { %v300_v20 = vmul.f32 1.442695, %v298_v18  ;;  %v302_v21 = vmul.f32 1.442695, %v299_v19  ;;  %p677_p9 = pnand %p676_p6, %p1064_p8  ;;  %s679_s29 = sshll.u32 %s777_s7, 4  ;;  %s680_s29 = int_to_ptr.vmem [resolvable:$false] %s679_s29 }
  0x84   : > { %s681_s30 = scalar_lea.vmem %s680_s29, 512  ;;  %p682_p2 = scmp.lt.s32.totalorder %s354_s1, %s680_s29 }
  0x85   : > { %587 = vpow2.f32 %v300_v20  ;;  %p678_p0 = pneg %p677_p9  ;;  %p683_p7 = scmp.lt.s32.totalorder %s681_s30, %s675_s22 }
  0x86   : > { %589 = vpow2.f32 %v302_v21 }
  0x87   : > { %p684_p13 = por %p683_p7, %p682_p2 }
  0x89   : > { %p685_p10 = pnand %p684_p13, %p678_p0 }
  0x8e   : > { %v584_v12 = vpop.eup %583 }
  0x8f   : > { %v321_v14 = vsub.f32 %v315_v11, %v584_v12  ;;  %v586_v15 = vpop.eup %585 }
  0x90   : > { %v322_v16 = vsub.f32 %v316_v13, %v586_v15 }
  0x92   : > { %v323_v17 = vadd.f32 %v322_v16, %v321_v14  ;;  %v588_v22 = vpop.eup %587 }
  0x93   : > { %v590_v23 = vpop.eup %589  ;;  %v304_v26 = vmul.f32 %v588_v22, %v296_v24 }
  0x94   : > { %324 = vadd.xlane.f32.xlu0 %v323_v17  ;;  %v305_v27 = vmul.f32 %v590_v23, %v297_v25 }
  0x95   : > { %v306_v28 = vadd.f32 %v304_v26, %v292_v5 }
  0x96   : > { %v307_v29 = vadd.f32 %v305_v27, %v293_v6 }
  0x97   : > { %308 = vst [vmem:[%s977_s6] sm:$0xff] %v306_v28 }
  0x98   : > { %309 = vst [vmem:[%s977_s6 + $0x8] sm:$0xff] %v307_v29 }
  0x99   : > { %688 = shalt.err (!%p685_p10)
}
  0x9a   : > { %s689_s28 = scalar_lea.hbm %s988_s20, 256  ;;  %s693_s14 = scalar_lea.hbm %s1041_s3, 1024 }
  0x9b   : > { %p690_p11 = scmp.ne.s32.totalorder %s988_s20, %s689_s28  ;;  %p694_p5 = scmp.lt.s32.totalorder %s988_s20, %s1041_s3 }
  0x9c   : > { %p695_p1 = scmp.lt.s32.totalorder %s693_s14, %s689_s28 }
  0x9d   : > { %p691_p3 = pnand %p690_p11, %p1064_p8 }
  0x9e   : > { %p696_p12 = por %p695_p1, %p694_p5 }
  0x9f   : > { %p692_p4 = pneg %p691_p3 }
  0xa1   : > { %p697_p6 = pnand %p696_p12, %p692_p4 }
  0xa3   : > { %700 = shalt.err (!%p697_p6)
}
  0xa4   : > { %525 = dma.vmem_to_hbm [thread:$0]  (%p1064_p8), %s354_s1, 256, %s988_s20, %s339_s17   ;;  %v310_v37 = vld [vmem:[#allocation9] sm:$0x1]  ;;  %vm336_vm1 = vcmask 0  }
  0xa5   : > { %s778_s24 = smov [#allocation9]   ;;  %p1065_p9 = scmp.eq.s32.totalorder %s825_s19, 3 }
  0xa6   : > { %s364_s11 = sshll.u32 %s778_s24, 4  ;;  %s365_s11 = int_to_ptr.vmem [resolvable:$true] %s364_s11 }
  0xa7   : > { %s701_s26 = scalar_lea.vmem %s365_s11, 16  ;;  %s707_s6 = scalar_lea.vmem %s365_s11, 32 }
  0xa8   : > { %p702_p8 = scmp.ne.s32.totalorder %s365_s11, %s701_s26  ;;  %p708_p7 = scmp.lt.s32.totalorder %s365_s11, %s365_s11 }
  0xa9   : > { %p709_p13 = scmp.lt.s32.totalorder %s707_s6, %s701_s26 }
  0xaa   : > { %p703_p0 = pnand %p702_p8, %p1065_p9 }
  0xab   : > { %p710_p10 = por %p709_p13, %p708_p7 }
  0xac   : > { %p704_p2 = pneg %p703_p0 }
  0xae   : > { %p711_p11 = pnand %p710_p10, %p704_p2 }
 0x11d   : > { %v325_v30 = vpop.xlane.xlu0 %324 }
 0x11e   : > { %v326_v31 = vrot.slane %v325_v30, 4 }
 0x120   : > { %v327_v32 = vadd.f32 %v326_v31, %v325_v30 }
 0x122   : > { %v328_v33 = vrot.slane %v327_v32, 2 }
 0x124   : > { %v329_v34 = vadd.f32 %v328_v33, %v327_v32 }
 0x126   : > { %v330_v35 = vrot.slane %v329_v34, 1 }
 0x128   : > { %v331_v36 = vadd.f32 %v330_v35, %v329_v34 }
 0x12a   : > { %517 = vpush %v331_v36 }
 0x15b   : > { %s518_s5 = spop %517 }
 0x15c   : > { %s333_s12 = smul.f32 -0.5, %s518_s5 }
 0x15e   : > { %v334_v38 = vstv %s333_s12 }
 0x15f   : > { %v335_v39 = vadd.f32 %v334_v38, %v310_v37 }
 0x161   : > { %337 = vst.msk [vmem:[#allocation9] sm:$0x1] %vm336_vm1, %v335_v39 }
 0x162   : > { %714 = shalt.err (!%p711_p11)
}
 0x163   : > { %p1066_p3 = pmov %p1065_p9 }
 0x165   : > { %527 = dma.vmem_to_hbm [thread:$0]  (%p1066_p3), %s365_s11, 16, %s1042_s4, [#allocation10]  }
 0x166   : > { %p1067_p4 = pmov %p1066_p3 }
 0x167   : > { %p1068_p5 = pmov %p1066_p3 }
 0x168   : > { %750 = dma.done.wait (%p1067_p4), [#allocation10], 16  }
 0x169   : > { %752 = vsyncadd (%p1068_p5), [#allocation10], 4294967280 }
 0x16a PF: > { %p548_p1 = scmp.ge.s32.totalorder %s771_s18, 2  ;;  %s380_s13 = sand.u32 1, %s759_s15  }
 0x16b   : > { %p1069_p12 = scmp.ne.s32.totalorder %s1054_s27, 0  ;;  %s381_s20 = scalar_lea.sflag [#allocation4], %s380_s13 }
 0x16d   : > { %p542_p6 = pnand %p548_p1, %p1069_p12 }
 0x16f   : > { %p543_p8 = pneg %p542_p6 }
 0x171   : > { %754 = dma.done.wait (%p543_p8), %s381_s20, 256  }
 0x172   : > { %756 = vsyncadd (%p543_p8), %s381_s20, 4294967040  ;;  %s1070_s1 = sld [smem:[#allocation15_spill]]  ;;  %p22_p9 = scmp.ge.s32.totalorder %s829_s21, 6  }
 0x173   : > { %s1071_s17 = sld [smem:[#allocation16_spill]]  ;;  %s1072_s15 = smov %s763_s16 }
 0x174   : > { %s1074_s18 = smov %s829_s21  ;;  %24 = sbr.rel (!%p22_p9) target bundleno = 11 (0xb), region = 113 }
 0x178   : > { %s1073_s16 = smov %s1070_s1 }
 0x179   :  { %386 = vsyncpa [#allocation3], 1 }
 0x17a   :  { %388 = vsyncpa [#allocation3 + $0x1], 1 }
 0x17b   :  { %389 = vsyncpa [#allocation6], 1 }
 0x17c   :  { %391 = vsyncpa [#allocation6 + $0x1], 1 }
 0x17d   :  { %392 = vsyncpa [#allocation4], 1 }
 0x17e   :  { %394 = vsyncpa [#allocation4 + $0x1], 1 }
 0x17f   :  { %395 = vsyncpa [#allocation10], 1 }

</bundles_post_ra>
